<compile_context>
chip_gen: v7x
topology: tpu7x:2x2x1
jax: 0.10.0
libtpu: 0.0.40
codegen_flags: <defaults>
</compile_context>

<pallas_src>
import jax
import jax.numpy as jnp
from jax.experimental import pallas as pl
from jax.experimental.pallas import tpu as pltpu

# IntGELU constants (match the PyTorch module)
_K = 1.4142
_CONST = 14
_C0 = -0.2888
_C1 = -1.769
_C2 = 1.0 / _C0  # coeff[2] /= coeff[0]

_LANE = 128
_MAX_WIDTH = 4096
_TARGET_BLOCK_ELEMS = 1024 * 1024   # ~4 MiB per f32 buffer


def _sublane(dtype) -> int:
    """Min second-to-last tile dim for a dtype (8 f32, 16 bf16, 32 int8)."""
    return {4: 8, 2: 16, 1: 32}.get(jnp.dtype(dtype).itemsize, 8)


def _pick_width(n: int, sub: int) -> int:
    """Pick a lane-dense width (multiple of 128) dividing n.

    Prefers widths whose row count fills the sublanes (rows >= sub, ideally
    rows % sub == 0) over the widest possible width.
    """
    start = min(_MAX_WIDTH, (n // _LANE) * _LANE)
    best, best_key = None, None
    for width in range(start, _LANE - 1, -_LANE):
        if n % width:
            continue
        rows = n // width
        key = (rows >= sub and rows % sub == 0, rows >= sub, width)
        if best_key is None or key > best_key:
            best, best_key = width, key
    return best


def _int_gelu_kernel(p_ref, x_ref, out_ref):
    """Elementwise integer-GELU on one (br, W) lane-dense tile.

    p_ref (SMEM, f32[5]): [sf, b_int, c_int, shift_int, out_sf]
    """
    sf = p_ref[0]
    b_int = p_ref[1]
    c_int = p_ref[2]
    shift_int = p_ref[3]
    out_sf = p_ref[4]

    x_int = x_ref[...].astype(jnp.float32) / sf

    # int_erf: sign * ((min(|x|, -b) + b)^2 + c), then floor(/2^const).
    # sign(0)=0 in the reference is irrelevant: result is multiplied by x_int=0.
    sign = jnp.where(x_int < 0.0, jnp.float32(-1.0), jnp.float32(1.0))
    abs_int = jnp.minimum(jnp.abs(x_int), -b_int)
    y_int = sign * ((abs_int + b_int) ** 2 + c_int)
    y_int = jnp.floor(y_int * jnp.float32(2.0 ** -_CONST))  # exact *2^-14 == /2^14

    out_ref[...] = (x_int * (y_int + shift_int) * out_sf).astype(out_ref.dtype)


def _int_gelu_elementwise(x, sf, b_int, c_int, shift_int, out_sf):
    """Plain-jnp path for the <128-element ragged tail (same numerics)."""
    x_int = x.astype(jnp.float32) / sf
    sign = jnp.where(x_int < 0.0, jnp.float32(-1.0), jnp.float32(1.0))
    abs_int = jnp.minimum(jnp.abs(x_int), -b_int)
    y_int = sign * ((abs_int + b_int) ** 2 + c_int)
    y_int = jnp.floor(y_int * jnp.float32(2.0 ** -_CONST))
    return x_int * (y_int + shift_int) * out_sf


def _launch(x2d, params, out_dtype):
    rows, width = x2d.shape
    sub = max(_sublane(x2d.dtype), _sublane(out_dtype))

    if rows <= sub:
        br = rows                                       # full first dim, 1 block
    else:
        br = max(sub, (_TARGET_BLOCK_ELEMS // width) // sub * sub)
        # Guarantee >= 2 blocks so the "parallel" grid axis can shard across
        # both v7x TensorCores (no-op on single-TC v5e/v6e).
        half = -(-rows // 2)
        half = -(-half // sub) * sub
        br = min(br, half)
        br = min(br, -(-rows // sub) * sub)

    grid = (pl.cdiv(rows, br),)

    # Explicit VMEM budget: double-buffered input + output, plus headroom.
    in_bytes = br * width * x2d.dtype.itemsize
    out_bytes = br * width * jnp.dtype(out_dtype).itemsize
    vmem_limit = int(min(max(2 * (in_bytes + out_bytes) + (4 << 20), 8 << 20),
                         48 << 20))

    return pl.pallas_call(
        _int_gelu_kernel,
        out_shape=jax.ShapeDtypeStruct((rows, width), out_dtype),
        grid=grid,
        in_specs=[
            pl.BlockSpec(memory_space=pltpu.MemorySpace.SMEM),   # scalar params
            pl.BlockSpec((br, width), lambda i: (i, 0)),         # x block
        ],
        out_specs=pl.BlockSpec((br, width), lambda i: (i, 0)),
        compiler_params=pltpu.CompilerParams(
            dimension_semantics=("parallel",),
            vmem_limit_bytes=vmem_limit),
    )(params, x2d)


def int_gelu(x, scaling_factor):
    """Quantized GELU forward. Returns (output, new_scaling_factor)."""
    orig_shape = x.shape
    orig_dtype = x.dtype
    n = int(x.size)

    # Hoisted scalar derivations (mirror the PyTorch scalar path exactly).
    sf = jnp.asarray(scaling_factor, dtype=jnp.float32)
    sf_erf = sf / _K
    b_int = jnp.floor(_C1 / sf_erf)
    c_int = jnp.floor(_C2 / (sf_erf * sf_erf))
    sig_sf = sf_erf * sf_erf * _C0 * (2.0 ** _CONST)
    shift_int = jnp.floor(1.0 / sig_sf)                 # torch: 1.0 // sig_sf
    out_sf = sf * sig_sf / 2.0
    params = jnp.stack([sf, b_int, c_int, shift_int, out_sf]).astype(jnp.float32)

    flat = x.reshape(-1)
    sub = _sublane(orig_dtype)
    bulk = (n // _LANE) * _LANE

    if bulk == 0:
        # Entire tensor smaller than one lane vector: trivial jnp path.
        out = _int_gelu_elementwise(flat, sf, b_int, c_int, shift_int,
                                    out_sf).astype(orig_dtype)
        return out.reshape(orig_shape), out_sf

    if bulk == n:
        # Common case: no padding, no slicing, just free reshapes.
        width = _pick_width(n, sub)
        x2d = flat.reshape(n // width, width)
        out = _launch(x2d, params, orig_dtype).reshape(orig_shape)
        return out, out_sf

    # Ragged (<128-element) tail: kernel on the 128-aligned bulk, plain jnp
    # on the tiny tail — avoids the old full-tensor jnp.pad + reshape[:n].
    # TODO(synk): a masked pltpu.store of the tail inside the last block would
    # also remove the bulk slice / concatenate copies.
    width = _pick_width(bulk, sub)
    head2d = flat[:bulk].reshape(bulk // width, width)
    head = _launch(head2d, params, orig_dtype).reshape(-1)
    tail = _int_gelu_elementwise(flat[bulk:], sf, b_int, c_int, shift_int,
                                 out_sf).astype(orig_dtype)
    out = jnp.concatenate([head, tail]).reshape(orig_shape)
    return out, out_sf


def _int_gelu_ref(x, scaling_factor):
    """Pure-JAX reference mirroring the PyTorch forward."""
    sf = jnp.asarray(scaling_factor, dtype=jnp.float32)
    x_int = x / sf
    sf_erf = sf / _K
    b_int = jnp.floor(_C1 / sf_erf)
    c_int = jnp.floor(_C2 / sf_erf ** 2)
    sign = jnp.sign(x_int)
    abs_int = jnp.minimum(jnp.abs(x_int), -b_int)
    y_int = sign * ((abs_int + b_int) ** 2 + c_int)
    sig_sf = sf_erf ** 2 * _C0
    y_int = jnp.floor(y_int / 2 ** _CONST)
    sig_sf = sig_sf * 2 ** _CONST
    shift_int = jnp.floor(1.0 / sig_sf)
    x_int = x_int * (y_int + shift_int)
    out_sf = sf * sig_sf / 2
    return x_int * out_sf, out_sf


if __name__ == "__main__":
    key = jax.random.PRNGKey(0)
    scaling_factor = 0.05  # typical activation quantization scale

    # NCHW-shaped activation, small and deterministic.
    x = jax.random.normal(key, (2, 4, 16, 16), dtype=jnp.float32)
    out, out_sf = int_gelu(x, scaling_factor)
    out = jax.block_until_ready(out)
    out_sf = jax.block_until_ready(out_sf)
    ref_out, ref_sf = _int_gelu_ref(x, scaling_factor)
    assert jnp.allclose(out, ref_out, rtol=1e-5, atol=1e-5), "output mismatch"
    assert jnp.allclose(out_sf, ref_sf, rtol=1e-6), "scaling factor mismatch"

    # Second small check: ragged (non-128-multiple) element count path.
    x2 = jax.random.normal(jax.random.PRNGKey(1), (3, 5, 7, 11),
                           dtype=jnp.float32)
    out2, _ = int_gelu(x2, scaling_factor)
    out2 = jax.block_until_ready(out2)
    ref_out2, _ = _int_gelu_ref(x2, scaling_factor)
    assert jnp.allclose(out2, ref_out2, rtol=1e-5, atol=1e-5), "ragged mismatch"

    print("KERNEL_OK")
</pallas_src>

<mosaic_0001>
module attributes {stable_mosaic.version = 11 : i64} {
  func.func @_int_gelu_kernel(%arg0: i32, %arg1: memref<5xf32, #tpu.memory_space<smem>>, %arg2: memref<8x256xf32, #tpu.memory_space<vmem>>, %arg3: memref<8x256xf32, #tpu.memory_space<vmem>>) attributes {dimension_semantics = [#tpu.dimension_semantics<parallel>], iteration_bounds = array<i64: 1>, scalar_prefetch = 0 : i64, scratch_operands = 0 : i64, tpu.core_type = #tpu.core_type<tc>, window_params = [{transform_indices = @transform_0, window_bounds = array<i64: 5>}, {transform_indices = @transform_1, window_bounds = array<i64: 8, 256>}, {transform_indices = @transform_2, window_bounds = array<i64: 8, 256>}]} {
    %c0 = arith.constant 0 : index
    %0 = memref.load %arg1[%c0] : memref<5xf32, #tpu.memory_space<smem>>
    %c1 = arith.constant 1 : index
    %1 = memref.load %arg1[%c1] : memref<5xf32, #tpu.memory_space<smem>>
    %c2 = arith.constant 2 : index
    %2 = memref.load %arg1[%c2] : memref<5xf32, #tpu.memory_space<smem>>
    %c3 = arith.constant 3 : index
    %3 = memref.load %arg1[%c3] : memref<5xf32, #tpu.memory_space<smem>>
    %c4 = arith.constant 4 : index
    %4 = memref.load %arg1[%c4] : memref<5xf32, #tpu.memory_space<smem>>
    %c0_0 = arith.constant 0 : index
    %c0_1 = arith.constant 0 : index
    %5 = vector.load %arg2[%c0_0, %c0_1] : memref<8x256xf32, #tpu.memory_space<vmem>>, vector<8x256xf32>
    %6 = vector.broadcast %0 : f32 to vector<8x256xf32>
    %7 = arith.divf %5, %6 : vector<8x256xf32>
    %cst = arith.constant 0.000000e+00 : f32
    %8 = vector.broadcast %cst : f32 to vector<8x256xf32>
    %9 = arith.cmpf olt, %7, %8 : vector<8x256xf32>
    %cst_2 = arith.constant -1.000000e+00 : f32
    %cst_3 = arith.constant 1.000000e+00 : f32
    %10 = vector.broadcast %cst_2 : f32 to vector<8x256xf32>
    %11 = vector.broadcast %cst_3 : f32 to vector<8x256xf32>
    %12 = arith.select %9, %10, %11 : vector<8x256xi1>, vector<8x256xf32>
    %13 = math.absf %7 : vector<8x256xf32>
    %cst_4 = arith.constant 0.000000e+00 : f32
    %14 = arith.subf %cst_4, %1 : f32
    %15 = vector.broadcast %14 : f32 to vector<8x256xf32>
    %16 = arith.minimumf %13, %15 : vector<8x256xf32>
    %17 = vector.broadcast %1 : f32 to vector<8x256xf32>
    %18 = arith.addf %16, %17 : vector<8x256xf32>
    %19 = arith.mulf %18, %18 : vector<8x256xf32>
    %20 = vector.broadcast %2 : f32 to vector<8x256xf32>
    %21 = arith.addf %19, %20 : vector<8x256xf32>
    %22 = arith.mulf %12, %21 : vector<8x256xf32>
    %cst_5 = arith.constant 6.10351563E-5 : f32
    %23 = vector.broadcast %cst_5 : f32 to vector<8x256xf32>
    %24 = arith.mulf %22, %23 : vector<8x256xf32>
    %25 = math.floor %24 : vector<8x256xf32>
    %26 = vector.broadcast %3 : f32 to vector<8x256xf32>
    %27 = arith.addf %25, %26 : vector<8x256xf32>
    %28 = arith.mulf %7, %27 : vector<8x256xf32>
    %29 = vector.broadcast %4 : f32 to vector<8x256xf32>
    %30 = arith.mulf %28, %29 : vector<8x256xf32>
    %c0_6 = arith.constant 0 : index
    %c0_7 = arith.constant 0 : index
    %31 = vector.load %arg3[%c0_6, %c0_7] : memref<8x256xf32, #tpu.memory_space<vmem>>, vector<8x256xf32>
    tpu.vector_store %arg3[%c0_6, %c0_7], %30 {strides = array<i32>} : memref<8x256xf32, #tpu.memory_space<vmem>>, vector<8x256xf32>,
    return
  }
  func.func @transform_0(%arg0: i32) -> i32 {
    %c0_i32 = arith.constant 0 : i32
    %c0_i32_0 = arith.constant 0 : i32
    return %c0_i32 : i32
  }
  func.func @transform_1(%arg0: i32) -> (i32, i32) {
    %c0_i32 = arith.constant 0 : i32
    %c0_i32_0 = arith.constant 0 : i32
    return %arg0, %c0_i32 : i32, i32
  }
  func.func @transform_2(%arg0: i32) -> (i32, i32) {
    %c0_i32 = arith.constant 0 : i32
    %c0_i32_0 = arith.constant 0 : i32
    return %arg0, %c0_i32 : i32, i32
  }
}

</mosaic_0001>

<bundles_post_ra>
// kernel: tpu_custom_call.1
= control target key start
LH: loop header
LB: loop body
LE: loop exit
PB: predicated region body
PF: predicated region fallthrough
CT: control target
= control target key end

     0   :  { %7 = vsyncpa [#allocation5], 0  ;;  %s221_s0 = inlined_call_operand.hbm [shape: f32[5], index: 0, kind: input, shape index: {}]   ;;  %s222_s1 = inlined_call_operand.hbm [shape: f32[8,256], index: 1, kind: input, shape index: {}]   ;;  %s223_s2 = inlined_call_operand.hbm [shape: f32[8,256], index: 2, kind: output, shape index: {}]  }
   0x1   :  { %8 = vsyncpa [#allocation3], 0 }
   0x2   :  { %9 = vsyncpa [#allocation4], 0  ;;  %s106_s11 = scalar_lea.hbm %s221_s0, 16 }
   0x3   :  { %p107_p0 = scmp.ne.s32.totalorder %s221_s0, %s106_s11  ;;  %p110_p1 = scmp.lt.u32.totalorder %s106_s11, %s221_s0 }
   0x5   :  { %p112_p2 = pnand %p110_p1, %p107_p0 }
   0x7   :  { %115 = shalt.err (!%p112_p2)
}
   0x8   :  { %s166_s16 = smov [#allocation2]   ;;  %s167_s19 = smov [#allocation6]  }
   0x9   :  { %17 = dma.hbm_to_smem %s221_s0, 16, %s166_s16, [#allocation5]  }
   0xa   :  { %s24_s20 = sshll.u32 %s167_s19, 4  ;;  %s116_s23 = scalar_lea.hbm %s222_s1, 256  ;;  %s25_s20 = int_to_ptr.vmem [resolvable:$true] %s24_s20 }
   0xb   :  { %p117_p3 = scmp.ne.s32.totalorder %s222_s1, %s116_s23  ;;  %p120_p4 = scmp.lt.u32.totalorder %s116_s23, %s222_s1 }
   0xd   :  { %p122_p5 = pnand %p120_p4, %p117_p3 }
   0xf   :  { %125 = shalt.err (!%p122_p5)
}
  0x10   :  { %s126_s28 = scalar_lea.vmem %s25_s20, 256  ;;  %p131_p7 = scmp.lt.s32.totalorder %s25_s20, %s25_s20 }
  0x11   :  { %p127_p6 = scmp.ne.s32.totalorder %s25_s20, %s126_s28  ;;  %p132_p8 = scmp.lt.s32.totalorder %s126_s28, %s126_s28 }
  0x13   :  { %p133_p9 = por %p132_p8, %p131_p7 }
  0x15   :  { %p134_p10 = pnand %p133_p9, %p127_p6 }
  0x17   :  { %137 = shalt.err (!%p134_p10)
}
  0x18   :  { %27 = dma.hbm_to_vmem [thread:$0]  %s222_s1, 256, %s25_s20, [#allocation3]  }
  0x19   :  { %160 = dma.done.wait [#allocation5], 16  }
  0x1a   :  { %161 = vsyncadd [#allocation5], 4294967280 }
  0x1b   :  { %162 = dma.done.wait [#allocation3], 256  }
  0x1c   :  { %163 = vsyncadd [#allocation3], 4294967040 }
  0x1d   :  { %34 = sfence }
  0x1e   :  { %s35_s30 = sld [smem:[#allocation2]]  ;;  %s96_s3 = sld [smem:[#allocation2 + $0x1]]  ;;  %v40_v1 = vld [vmem:[#allocation6] sm:$0xff]  ;;  %v41_v2 = vld [vmem:[#allocation6 + $0x8] sm:$0xff]  ;;  %v168_v17 = vmov 1.0  }
  0x1f   :  { %s97_s5 = sld [smem:[#allocation2 + $0x2]]  ;;  %s98_s1 = sld [smem:[#allocation2 + $0x3]] }
  0x20   :  { %s99_s6 = sld [smem:[#allocation2 + $0x4]]  ;;  %s169_s7 = smov [#allocation7]  }
  0x21   :  { %s86_s8 = sshll.u32 %s169_s7, 4  ;;  %s87_s8 = int_to_ptr.vmem [resolvable:$true] %s86_s8 }
  0x22   :  { %s138_s9 = scalar_lea.vmem %s87_s8, 256  ;;  %p143_p12 = scmp.lt.s32.totalorder %s87_s8, %s87_s8 }
  0x23   :  { %p139_p11 = scmp.ne.s32.totalorder %s87_s8, %s138_s9  ;;  %p144_p13 = scmp.lt.s32.totalorder %s138_s9, %s138_s9 }
  0x24   :  { %v42_v0 = vstv %s35_s30  ;;  %s52_s4 = ssub.f32 0.0, %s96_s3  ;;  %v56_v9 = vstv %s96_s3 }
  0x25   :  { %104 = vrcp.f32 %v42_v0  ;;  %v61_v14 = vstv %s97_s5  ;;  %v70_v26 = vstv %s98_s1  ;;  %p145_p0 = por %p144_p13, %p143_p12 }
  0x26   :  { %v53_v6 = vstv %s52_s4  ;;  %v75_v31 = vstv %s99_s6 }
  0x27   :  { %p146_p1 = pnand %p145_p0, %p139_p11 }
  0x2f   :  { %v105_v3 = vpop.eup %104 }
  0x30   :  { %v44_v4 = vmul.f32 %v105_v3, %v40_v1  ;;  %v45_v5 = vmul.f32 %v105_v3, %v41_v2 }
  0x32   :  { %v50_v7 = vand.u32 2147483647, %v44_v4  ;;  %v51_v8 = vand.u32 2147483647, %v45_v5  ;;  %vm46_vm0 = vcmp.lt.f32.partialorder %v44_v4, 0.0  ;;  %vm47_vm1 = vcmp.lt.f32.partialorder %v45_v5, 0.0 }
  0x33   :  { %v48_v18 = vsel %vm46_vm0, -1.0, %v168_v17  ;;  %v49_v19 = vsel %vm47_vm1, -1.0, %v168_v17 }
  0x34   :  { %v54_v10 = vmin.f32 %v50_v7, %v53_v6  ;;  %v55_v11 = vmin.f32 %v51_v8, %v53_v6 }
  0x36   :  { %v57_v12 = vadd.f32 %v56_v9, %v54_v10  ;;  %v58_v13 = vadd.f32 %v56_v9, %v55_v11 }
  0x38   :  { %v59_v15 = vmul.f32 %v57_v12, %v57_v12  ;;  %v60_v16 = vmul.f32 %v58_v13, %v58_v13 }
  0x3a   :  { %v62_v20 = vadd.f32 %v61_v14, %v59_v15  ;;  %v63_v21 = vadd.f32 %v61_v14, %v60_v16 }
  0x3c   :  { %v64_v22 = vmul.f32 %v62_v20, %v48_v18  ;;  %v65_v23 = vmul.f32 %v63_v21, %v49_v19 }
  0x3e   :  { %v66_v24 = vmul.f32 6.1035156e-05, %v64_v22  ;;  %v67_v25 = vmul.f32 6.1035156e-05, %v65_v23 }
  0x40   :  { %v68_v27 = vfloor.f32 %v66_v24  ;;  %v69_v28 = vfloor.f32 %v67_v25 }
  0x42   :  { %v71_v29 = vadd.f32 %v70_v26, %v68_v27  ;;  %v72_v30 = vadd.f32 %v70_v26, %v69_v28 }
  0x44   :  { %v73_v32 = vmul.f32 %v71_v29, %v44_v4  ;;  %v74_v33 = vmul.f32 %v72_v30, %v45_v5 }
  0x46   :  { %v76_v34 = vmul.f32 %v75_v31, %v73_v32  ;;  %v77_v35 = vmul.f32 %v75_v31, %v74_v33 }
  0x48   :  { %78 = vst [vmem:[#allocation7] sm:$0xff] %v76_v34  ;;  %79 = vst [vmem:[#allocation7 + $0x8] sm:$0xff] %v77_v35 }
  0x49   :  { %149 = shalt.err (!%p146_p1)
}
  0x4a   :  { %s150_s12 = scalar_lea.hbm %s223_s2, 256 }
  0x4b   :  { %p151_p2 = scmp.ne.s32.totalorder %s223_s2, %s150_s12  ;;  %p154_p3 = scmp.lt.u32.totalorder %s150_s12, %s223_s2 }
  0x4d   :  { %p156_p4 = pnand %p154_p3, %p151_p2 }
  0x4f   :  { %159 = shalt.err (!%p156_p4)
}
  0x50   :  { %89 = dma.vmem_to_hbm [thread:$0]  %s87_s8, 256, %s223_s2, [#allocation4]  }
  0x51   :  { %164 = dma.done.wait [#allocation4], 256  }
  0x52   :  { %165 = vsyncadd [#allocation4], 4294967040 }
  0x53   :  { %93 = vsyncpa [#allocation3], 1 }
  0x54   :  { %94 = vsyncpa [#allocation4], 1 }
  0x55   :  { %95 = vsyncpa [#allocation5], 1 }

</bundles_post_ra>
